<compile_context>
chip_gen: v7x
topology: tpu7x:2x2x1
jax: 0.10.0
libtpu: 0.0.40
codegen_flags: <defaults>
</compile_context>

<pallas_src>
import functools

import jax
import jax.numpy as jnp
from jax.experimental import pallas as pl
from jax.experimental.pallas import tpu as pltpu

INPUT_DIM = 128
HIDDEN = 128
OUT_DIM = 49
PAD_OUT = 128          # lane-dense padded output width
NEG_SLOPE = 0.01       # F.leaky_relu default negative slope
DEFAULT_BATCH_TILE = 1024
ALIGN = 16             # bf16 sublane packing: keep batch tiles 16-row aligned


def _round_up(n, m):
    return (n + m - 1) // m * m


def _leaky_relu(x):
    return jnp.where(x > 0, x, NEG_SLOPE * x)


def classifier_kernel(x_ref,
                      w1_ref, b1_ref,
                      w2_ref, b2_ref,
                      w3_ref, b3_ref,
                      w4_ref, b4_ref,
                      w5_ref, b5_ref,
                      o_ref):
    # Fused 5-layer MLP for one batch tile: MXU matmuls in bf16 with f32
    # accumulation; bias-add and leaky_relu stay in f32 on the VPU.
    h = jnp.dot(x_ref[...], w1_ref[...],
                preferred_element_type=jnp.float32) + b1_ref[...]
    h = _leaky_relu(h)

    h = jnp.dot(h.astype(jnp.bfloat16), w2_ref[...],
                preferred_element_type=jnp.float32) + b2_ref[...]
    h = _leaky_relu(h)

    h = jnp.dot(h.astype(jnp.bfloat16), w3_ref[...],
                preferred_element_type=jnp.float32) + b3_ref[...]
    h = _leaky_relu(h)

    h = jnp.dot(h.astype(jnp.bfloat16), w4_ref[...],
                preferred_element_type=jnp.float32) + b4_ref[...]
    h = _leaky_relu(h)

    out = jnp.dot(h.astype(jnp.bfloat16), w5_ref[...],
                  preferred_element_type=jnp.float32) + b5_ref[...]
    # Lane-dense (tile, 128) store; the real 49 columns are sliced outside.
    o_ref[...] = out.astype(o_ref.dtype)


@functools.partial(jax.jit, static_argnames=("batch_tile",))
def classifier_forward(x, params, batch_tile=DEFAULT_BATCH_TILE):
    """x: (B, 128) float32. params: dict of w1..w5 (in,out) and b1..b5 (1,out)."""
    B = x.shape[0]

    # Bounded, 16-aligned batch tile; zero-pad ragged batches so B % tile == 0.
    bt = min(_round_up(batch_tile, ALIGN), _round_up(B, ALIGN))
    b_pad = _round_up(B, bt)
    if b_pad != B:
        x = jnp.pad(x, ((0, b_pad - B), (0, 0)))

    x_bf16 = x.astype(jnp.bfloat16)

    # bf16 weights (native MXU datapath); biases stay f32 for the VPU add.
    w = [params[f"w{i}"].astype(jnp.bfloat16) for i in range(1, 6)]
    b = [params[f"b{i}"].astype(jnp.float32) for i in range(1, 6)]
    # Pad the final layer to a lane-dense 128-wide output.
    w[4] = jnp.pad(w[4], ((0, 0), (0, PAD_OUT - OUT_DIM)))
    b[4] = jnp.pad(b[4], ((0, 0), (0, PAD_OUT - OUT_DIM)))

    grid = (b_pad // bt,)

    def x_map(i):
        return (i, 0)

    def rep_map(i):  # weights/biases: same (resident) block for every tile
        return (0, 0)

    def w_spec(shape):
        return pl.BlockSpec(shape, rep_map)

    out = pl.pallas_call(
        classifier_kernel,
        out_shape=jax.ShapeDtypeStruct((b_pad, PAD_OUT), jnp.float32),
        grid_spec=pltpu.PrefetchScalarGridSpec(
            num_scalar_prefetch=0,
            grid=grid,
            in_specs=[
                pl.BlockSpec((bt, INPUT_DIM), x_map),
                w_spec((INPUT_DIM, HIDDEN)), w_spec((1, HIDDEN)),
                w_spec((HIDDEN, HIDDEN)),    w_spec((1, HIDDEN)),
                w_spec((HIDDEN, HIDDEN)),    w_spec((1, HIDDEN)),
                w_spec((HIDDEN, HIDDEN)),    w_spec((1, HIDDEN)),
                w_spec((HIDDEN, PAD_OUT)),   w_spec((1, PAD_OUT)),
            ],
            out_specs=pl.BlockSpec((bt, PAD_OUT), x_map),
        ),
        compiler_params=pltpu.CompilerParams(
            dimension_semantics=("parallel",)),
    )(x_bf16, w[0], b[0], w[1], b[1], w[2], b[2], w[3], b[3], w[4], b[4])

    # Drop batch padding and the 79 padded output columns.
    return out[:B, :OUT_DIM]


def init_params(key):
    """Deterministic init mimicking nn.Linear default (U(-1/sqrt(fan_in), +))."""
    dims = [(INPUT_DIM, HIDDEN), (HIDDEN, HIDDEN), (HIDDEN, HIDDEN),
            (HIDDEN, HIDDEN), (HIDDEN, OUT_DIM)]
    params = {}
    for idx, (fan_in, fan_out) in enumerate(dims, start=1):
        key, kw, kb = jax.random.split(key, 3)
        bound = 1.0 / jnp.sqrt(fan_in)
        params[f"w{idx}"] = jax.random.uniform(
            kw, (fan_in, fan_out), jnp.float32, -bound, bound)
        params[f"b{idx}"] = jax.random.uniform(
            kb, (1, fan_out), jnp.float32, -bound, bound)
    return params


def reference_forward(x, params):
    h = x
    for i in range(1, 5):
        h = h @ params[f"w{i}"] + params[f"b{i}"]
        h = jnp.where(h > 0, h, NEG_SLOPE * h)
    return h @ params["w5"] + params["b5"]


if __name__ == "__main__":
    key = jax.random.PRNGKey(0)
    kx, kx2, kp = jax.random.split(key, 3)
    params = init_params(kp)

    # Small demo batch (latency-bound; single grid step).
    B = 8
    x = jax.random.normal(kx, (B, INPUT_DIM), dtype=jnp.float32)
    out = jax.block_until_ready(classifier_forward(x, params))
    ref = reference_forward(x, params)
    assert out.shape == (B, OUT_DIM)
    # bf16 matmul inputs (f32 accumulate) -> loosened tolerance vs f32 reference.
    assert jnp.allclose(out, ref, atol=2e-2, rtol=2e-2), "mismatch vs reference (B=8)"

    # Ragged, multi-tile batch: exercises padding + a real multi-step grid.
    B2 = 300
    x2 = jax.random.normal(kx2, (B2, INPUT_DIM), dtype=jnp.float32)
    out2 = jax.block_until_ready(classifier_forward(x2, params, batch_tile=128))
    ref2 = reference_forward(x2, params)
    assert out2.shape == (B2, OUT_DIM)
    assert jnp.allclose(out2, ref2, atol=2e-2, rtol=2e-2), "mismatch vs reference (B=300)"

    print("KERNEL_OK")
</pallas_src>

<mosaic_0001>
module attributes {stable_mosaic.version = 11 : i64} {
  func.func @classifier_kernel(%arg0: i32, %arg1: memref<16x128xbf16, #tpu.memory_space<vmem>>, %arg2: memref<128x128xbf16, #tpu.memory_space<vmem>>, %arg3: memref<1x128xf32, #tpu.memory_space<vmem>>, %arg4: memref<128x128xbf16, #tpu.memory_space<vmem>>, %arg5: memref<1x128xf32, #tpu.memory_space<vmem>>, %arg6: memref<128x128xbf16, #tpu.memory_space<vmem>>, %arg7: memref<1x128xf32, #tpu.memory_space<vmem>>, %arg8: memref<128x128xbf16, #tpu.memory_space<vmem>>, %arg9: memref<1x128xf32, #tpu.memory_space<vmem>>, %arg10: memref<128x128xbf16, #tpu.memory_space<vmem>>, %arg11: memref<1x128xf32, #tpu.memory_space<vmem>>, %arg12: memref<16x128xf32, #tpu.memory_space<vmem>>) attributes {dimension_semantics = [#tpu.dimension_semantics<parallel>], iteration_bounds = array<i64: 1>, scalar_prefetch = 0 : i64, scratch_operands = 0 : i64, tpu.core_type = #tpu.core_type<tc>, window_params = [{transform_indices = @transform_0, window_bounds = array<i64: 16, 128>}, {pipeline_mode = #tpu.pipeline_mode<synchronous>, transform_indices = @transform_1, window_bounds = array<i64: 128, 128>}, {pipeline_mode = #tpu.pipeline_mode<synchronous>, transform_indices = @transform_2, window_bounds = array<i64: 1, 128>}, {pipeline_mode = #tpu.pipeline_mode<synchronous>, transform_indices = @transform_3, window_bounds = array<i64: 128, 128>}, {pipeline_mode = #tpu.pipeline_mode<synchronous>, transform_indices = @transform_4, window_bounds = array<i64: 1, 128>}, {pipeline_mode = #tpu.pipeline_mode<synchronous>, transform_indices = @transform_5, window_bounds = array<i64: 128, 128>}, {pipeline_mode = #tpu.pipeline_mode<synchronous>, transform_indices = @transform_6, window_bounds = array<i64: 1, 128>}, {pipeline_mode = #tpu.pipeline_mode<synchronous>, transform_indices = @transform_7, window_bounds = array<i64: 128, 128>}, {pipeline_mode = #tpu.pipeline_mode<synchronous>, transform_indices = @transform_8, window_bounds = array<i64: 1, 128>}, {pipeline_mode = #tpu.pipeline_mode<synchronous>, transform_indices = @transform_9, window_bounds = array<i64: 128, 128>}, {pipeline_mode = #tpu.pipeline_mode<synchronous>, transform_indices = @transform_10, window_bounds = array<i64: 1, 128>}, {transform_indices = @transform_11, window_bounds = array<i64: 16, 128>}]} {
    %c0 = arith.constant 0 : index
    %c0_0 = arith.constant 0 : index
    %0 = vector.load %arg1[%c0, %c0_0] : memref<16x128xbf16, #tpu.memory_space<vmem>>, vector<16x128xbf16>
    %c0_1 = arith.constant 0 : index
    %c0_2 = arith.constant 0 : index
    %1 = vector.load %arg2[%c0_1, %c0_2] : memref<128x128xbf16, #tpu.memory_space<vmem>>, vector<128x128xbf16>
    %cst = arith.constant dense<0.000000e+00> : vector<16x128xf32>
    %2 = tpu.matmul %0, %1, %cst {dimension_numbers = #tpu.dot_dimension_numbers<[1], [0], [0], [1], [0, 0, 1, 1], [], []>} : vector<16x128xbf16>, vector<128x128xbf16>, vector<16x128xf32> -> vector<16x128xf32>
    %c0_3 = arith.constant 0 : index
    %c0_4 = arith.constant 0 : index
    %3 = vector.load %arg3[%c0_3, %c0_4] : memref<1x128xf32, #tpu.memory_space<vmem>>, vector<1x128xf32>
    %4 = vector.broadcast %3 : vector<1x128xf32> to vector<16x128xf32>
    %5 = arith.addf %2, %4 : vector<16x128xf32>
    %cst_5 = arith.constant 0.000000e+00 : f32
    %6 = vector.broadcast %cst_5 : f32 to vector<16x128xf32>
    %7 = arith.cmpf ogt, %5, %6 : vector<16x128xf32>
    %cst_6 = arith.constant 0.00999999977 : f32
    %8 = vector.broadcast %cst_6 : f32 to vector<16x128xf32>
    %9 = arith.mulf %8, %5 : vector<16x128xf32>
    %10 = arith.select %7, %5, %9 : vector<16x128xi1>, vector<16x128xf32>
    %11 = arith.truncf %10 : vector<16x128xf32> to vector<16x128xbf16>
    %c0_7 = arith.constant 0 : index
    %c0_8 = arith.constant 0 : index
    %12 = vector.load %arg4[%c0_7, %c0_8] : memref<128x128xbf16, #tpu.memory_space<vmem>>, vector<128x128xbf16>
    %cst_9 = arith.constant dense<0.000000e+00> : vector<16x128xf32>
    %13 = tpu.matmul %11, %12, %cst_9 {dimension_numbers = #tpu.dot_dimension_numbers<[1], [0], [0], [1], [0, 0, 1, 1], [], []>} : vector<16x128xbf16>, vector<128x128xbf16>, vector<16x128xf32> -> vector<16x128xf32>
    %c0_10 = arith.constant 0 : index
    %c0_11 = arith.constant 0 : index
    %14 = vector.load %arg5[%c0_10, %c0_11] : memref<1x128xf32, #tpu.memory_space<vmem>>, vector<1x128xf32>
    %15 = vector.broadcast %14 : vector<1x128xf32> to vector<16x128xf32>
    %16 = arith.addf %13, %15 : vector<16x128xf32>
    %cst_12 = arith.constant 0.000000e+00 : f32
    %17 = vector.broadcast %cst_12 : f32 to vector<16x128xf32>
    %18 = arith.cmpf ogt, %16, %17 : vector<16x128xf32>
    %cst_13 = arith.constant 0.00999999977 : f32
    %19 = vector.broadcast %cst_13 : f32 to vector<16x128xf32>
    %20 = arith.mulf %19, %16 : vector<16x128xf32>
    %21 = arith.select %18, %16, %20 : vector<16x128xi1>, vector<16x128xf32>
    %22 = arith.truncf %21 : vector<16x128xf32> to vector<16x128xbf16>
    %c0_14 = arith.constant 0 : index
    %c0_15 = arith.constant 0 : index
    %23 = vector.load %arg6[%c0_14, %c0_15] : memref<128x128xbf16, #tpu.memory_space<vmem>>, vector<128x128xbf16>
    %cst_16 = arith.constant dense<0.000000e+00> : vector<16x128xf32>
    %24 = tpu.matmul %22, %23, %cst_16 {dimension_numbers = #tpu.dot_dimension_numbers<[1], [0], [0], [1], [0, 0, 1, 1], [], []>} : vector<16x128xbf16>, vector<128x128xbf16>, vector<16x128xf32> -> vector<16x128xf32>
    %c0_17 = arith.constant 0 : index
    %c0_18 = arith.constant 0 : index
    %25 = vector.load %arg7[%c0_17, %c0_18] : memref<1x128xf32, #tpu.memory_space<vmem>>, vector<1x128xf32>
    %26 = vector.broadcast %25 : vector<1x128xf32> to vector<16x128xf32>
    %27 = arith.addf %24, %26 : vector<16x128xf32>
    %cst_19 = arith.constant 0.000000e+00 : f32
    %28 = vector.broadcast %cst_19 : f32 to vector<16x128xf32>
    %29 = arith.cmpf ogt, %27, %28 : vector<16x128xf32>
    %cst_20 = arith.constant 0.00999999977 : f32
    %30 = vector.broadcast %cst_20 : f32 to vector<16x128xf32>
    %31 = arith.mulf %30, %27 : vector<16x128xf32>
    %32 = arith.select %29, %27, %31 : vector<16x128xi1>, vector<16x128xf32>
    %33 = arith.truncf %32 : vector<16x128xf32> to vector<16x128xbf16>
    %c0_21 = arith.constant 0 : index
    %c0_22 = arith.constant 0 : index
    %34 = vector.load %arg8[%c0_21, %c0_22] : memref<128x128xbf16, #tpu.memory_space<vmem>>, vector<128x128xbf16>
    %cst_23 = arith.constant dense<0.000000e+00> : vector<16x128xf32>
    %35 = tpu.matmul %33, %34, %cst_23 {dimension_numbers = #tpu.dot_dimension_numbers<[1], [0], [0], [1], [0, 0, 1, 1], [], []>} : vector<16x128xbf16>, vector<128x128xbf16>, vector<16x128xf32> -> vector<16x128xf32>
    %c0_24 = arith.constant 0 : index
    %c0_25 = arith.constant 0 : index
    %36 = vector.load %arg9[%c0_24, %c0_25] : memref<1x128xf32, #tpu.memory_space<vmem>>, vector<1x128xf32>
    %37 = vector.broadcast %36 : vector<1x128xf32> to vector<16x128xf32>
    %38 = arith.addf %35, %37 : vector<16x128xf32>
    %cst_26 = arith.constant 0.000000e+00 : f32
    %39 = vector.broadcast %cst_26 : f32 to vector<16x128xf32>
    %40 = arith.cmpf ogt, %38, %39 : vector<16x128xf32>
    %cst_27 = arith.constant 0.00999999977 : f32
    %41 = vector.broadcast %cst_27 : f32 to vector<16x128xf32>
    %42 = arith.mulf %41, %38 : vector<16x128xf32>
    %43 = arith.select %40, %38, %42 : vector<16x128xi1>, vector<16x128xf32>
    %44 = arith.truncf %43 : vector<16x128xf32> to vector<16x128xbf16>
    %c0_28 = arith.constant 0 : index
    %c0_29 = arith.constant 0 : index
    %45 = vector.load %arg10[%c0_28, %c0_29] : memref<128x128xbf16, #tpu.memory_space<vmem>>, vector<128x128xbf16>
    %cst_30 = arith.constant dense<0.000000e+00> : vector<16x128xf32>
    %46 = tpu.matmul %44, %45, %cst_30 {dimension_numbers = #tpu.dot_dimension_numbers<[1], [0], [0], [1], [0, 0, 1, 1], [], []>} : vector<16x128xbf16>, vector<128x128xbf16>, vector<16x128xf32> -> vector<16x128xf32>
    %c0_31 = arith.constant 0 : index
    %c0_32 = arith.constant 0 : index
    %47 = vector.load %arg11[%c0_31, %c0_32] : memref<1x128xf32, #tpu.memory_space<vmem>>, vector<1x128xf32>
    %48 = vector.broadcast %47 : vector<1x128xf32> to vector<16x128xf32>
    %49 = arith.addf %46, %48 : vector<16x128xf32>
    %c0_33 = arith.constant 0 : index
    %c0_34 = arith.constant 0 : index
    %50 = vector.load %arg12[%c0_33, %c0_34] : memref<16x128xf32, #tpu.memory_space<vmem>>, vector<16x128xf32>
    tpu.vector_store %arg12[%c0_33, %c0_34], %49 {strides = array<i32>} : memref<16x128xf32, #tpu.memory_space<vmem>>, vector<16x128xf32>,
    return
  }
  func.func @transform_0(%arg0: i32) -> (i32, i32) {
    %c0_i32 = arith.constant 0 : i32
    %c0_i32_0 = arith.constant 0 : i32
    return %arg0, %c0_i32 : i32, i32
  }
  func.func @transform_1(%arg0: i32) -> (i32, i32) {
    %c0_i32 = arith.constant 0 : i32
    %c0_i32_0 = arith.constant 0 : i32
    %c0_i32_1 = arith.constant 0 : i32
    return %c0_i32, %c0_i32_0 : i32, i32
  }
  func.func @transform_2(%arg0: i32) -> (i32, i32) {
    %c0_i32 = arith.constant 0 : i32
    %c0_i32_0 = arith.constant 0 : i32
    %c0_i32_1 = arith.constant 0 : i32
    return %c0_i32, %c0_i32_0 : i32, i32
  }
  func.func @transform_3(%arg0: i32) -> (i32, i32) {
    %c0_i32 = arith.constant 0 : i32
    %c0_i32_0 = arith.constant 0 : i32
    %c0_i32_1 = arith.constant 0 : i32
    return %c0_i32, %c0_i32_0 : i32, i32
  }
  func.func @transform_4(%arg0: i32) -> (i32, i32) {
    %c0_i32 = arith.constant 0 : i32
    %c0_i32_0 = arith.constant 0 : i32
    %c0_i32_1 = arith.constant 0 : i32
    return %c0_i32, %c0_i32_0 : i32, i32
  }
  func.func @transform_5(%arg0: i32) -> (i32, i32) {
    %c0_i32 = arith.constant 0 : i32
    %c0_i32_0 = arith.constant 0 : i32
    %c0_i32_1 = arith.constant 0 : i32
    return %c0_i32, %c0_i32_0 : i32, i32
  }
  func.func @transform_6(%arg0: i32) -> (i32, i32) {
    %c0_i32 = arith.constant 0 : i32
    %c0_i32_0 = arith.constant 0 : i32
    %c0_i32_1 = arith.constant 0 : i32
    return %c0_i32, %c0_i32_0 : i32, i32
  }
  func.func @transform_7(%arg0: i32) -> (i32, i32) {
    %c0_i32 = arith.constant 0 : i32
    %c0_i32_0 = arith.constant 0 : i32
    %c0_i32_1 = arith.constant 0 : i32
    return %c0_i32, %c0_i32_0 : i32, i32
  }
  func.func @transform_8(%arg0: i32) -> (i32, i32) {
    %c0_i32 = arith.constant 0 : i32
    %c0_i32_0 = arith.constant 0 : i32
    %c0_i32_1 = arith.constant 0 : i32
    return %c0_i32, %c0_i32_0 : i32, i32
  }
  func.func @transform_9(%arg0: i32) -> (i32, i32) {
    %c0_i32 = arith.constant 0 : i32
    %c0_i32_0 = arith.constant 0 : i32
    %c0_i32_1 = arith.constant 0 : i32
    return %c0_i32, %c0_i32_0 : i32, i32
  }
  func.func @transform_10(%arg0: i32) -> (i32, i32) {
    %c0_i32 = arith.constant 0 : i32
    %c0_i32_0 = arith.constant 0 : i32
    %c0_i32_1 = arith.constant 0 : i32
    return %c0_i32, %c0_i32_0 : i32, i32
  }
  func.func @transform_11(%arg0: i32) -> (i32, i32) {
    %c0_i32 = arith.constant 0 : i32
    %c0_i32_0 = arith.constant 0 : i32
    return %arg0, %c0_i32 : i32, i32
  }
}

</mosaic_0001>

<bundles_post_ra>
// kernel: classifier_forward.1
= control target key start
LH: loop header
LB: loop body
LE: loop exit
PB: predicated region body
PF: predicated region fallthrough
CT: control target
= control target key end

     0   :  { %v875_v0 = vmov 0.0   ;;  %vm876_vm0 = vmmov 0   ;;  %s1131_s1 = inlined_call_operand.vmem [shape: bf16[128,128], index: 1, kind: input, shape index: {}]   ;;  %s1132_s3 = inlined_call_operand.vmem [shape: bf16[128,128], index: 3, kind: input, shape index: {}]   ;;  %s1133_s0 = inlined_call_operand.vmem [shape: bf16[16,128], index: 0, kind: input, shape index: {}]   ;;  %s1134_s5 = inlined_call_operand.vmem [shape: bf16[128,128], index: 5, kind: input, shape index: {}]   ;;  %s1135_s2 = inlined_call_operand.vmem [shape: f32[1,128], index: 2, kind: input, shape index: {}]   ;;  %s1136_s7 = inlined_call_operand.vmem [shape: bf16[128,128], index: 7, kind: input, shape index: {}]   ;;  %s1137_s4 = inlined_call_operand.vmem [shape: f32[1,128], index: 4, kind: input, shape index: {}]   ;;  %s1138_s9 = inlined_call_operand.vmem [shape: bf16[128,128], index: 9, kind: input, shape index: {}]   ;;  %s1139_s6 = inlined_call_operand.vmem [shape: f32[1,128], index: 6, kind: input, shape index: {}]   ;;  %s1140_s8 = inlined_call_operand.vmem [shape: f32[1,128], index: 8, kind: input, shape index: {}]   ;;  %s1141_s10 = inlined_call_operand.vmem [shape: f32[1,128], index: 10, kind: input, shape index: {}]   ;;  %s1142_s11 = inlined_call_operand.vmem [shape: f32[16,128], index: 11, kind: output, shape index: {}]  }
   0x1   :  { %732 = vmatprep.subr.bf16.mxu0 %v875_v0  ;;  %v834_v1 = vld [vmem:[%s1131_s1] sm:$0xff]   ;;  %748 = vmatprep.mubr.msk.bf16.mxu0 %vm876_vm0, %v875_v0  ;;  %v835_v2 = vld [vmem:[%s1131_s1 + $0x8] sm:$0xff]   ;;  %v836_v3 = vld [vmem:[%s1131_s1 + $0x10] sm:$0xff]  }
   0x2   :  { %752 = vmatprep.subr.bf16.mxu1 %v875_v0  ;;  %768 = vmatprep.mubr.msk.bf16.mxu1 %vm876_vm0, %v875_v0  ;;  %v843_v4 = vld [vmem:[%s1132_s3] sm:$0xff]   ;;  %v837_v5 = vld [vmem:[%s1131_s1 + $0x18] sm:$0xff]   ;;  %v844_v6 = vld [vmem:[%s1132_s3 + $0x8] sm:$0xff]  }
   0x3   :  { %733 = vmatpush3.bf16.msra.mxu0 %v834_v1  ;;  %753 = vmatpush3.bf16.msra.mxu1 %v843_v4  ;;  %v838_v7 = vld [vmem:[%s1131_s1 + $0x20] sm:$0xff]   ;;  %v845_v8 = vld [vmem:[%s1132_s3 + $0x10] sm:$0xff]   ;;  %v839_v9 = vld [vmem:[%s1131_s1 + $0x28] sm:$0xff]  }
   0x4   :  { %734 = vmatprep.subr.bf16.mxu0 %v875_v0  ;;  %754 = vmatprep.subr.bf16.mxu1 %v875_v0  ;;  %v846_v10 = vld [vmem:[%s1132_s3 + $0x18] sm:$0xff]   ;;  %v840_v11 = vld [vmem:[%s1131_s1 + $0x30] sm:$0xff]   ;;  %v847_v12 = vld [vmem:[%s1132_s3 + $0x20] sm:$0xff]  }
   0x5   :  { %v841_v13 = vld [vmem:[%s1131_s1 + $0x38] sm:$0xff]   ;;  %v848_v14 = vld [vmem:[%s1132_s3 + $0x28] sm:$0xff]   ;;  %v842_v15 = vld [vmem:[%s1133_s0] sm:$0xff]  }
   0x6   :  { %v849_v16 = vld [vmem:[%s1132_s3 + $0x30] sm:$0xff]   ;;  %v850_v17 = vld [vmem:[%s1132_s3 + $0x38] sm:$0xff]   ;;  %v851_v18 = vld [vmem:[%s1134_s5] sm:$0xff]  }
   0x7   :  { %735 = vmatpush3.bf16.msra.mxu0 %v835_v2  ;;  %755 = vmatpush3.bf16.msra.mxu1 %v844_v6  ;;  %v852_v19 = vld [vmem:[%s1134_s5 + $0x8] sm:$0xff]   ;;  %v853_v20 = vld [vmem:[%s1134_s5 + $0x10] sm:$0xff]   ;;  %v854_v21 = vld [vmem:[%s1134_s5 + $0x18] sm:$0xff]  }
   0x8   :  { %736 = vmatprep.subr.bf16.mxu0 %v875_v0  ;;  %756 = vmatprep.subr.bf16.mxu1 %v875_v0  ;;  %v855_v22 = vld [vmem:[%s1134_s5 + $0x20] sm:$0xff]   ;;  %v856_v23 = vld [vmem:[%s1134_s5 + $0x28] sm:$0xff]   ;;  %v857_v36 = vld [vmem:[%s1134_s5 + $0x30] sm:$0xff]  }
   0x9   :  { %v641_v24 = vld [vmem:[%s1135_s2] ss:$0 sm:$0xff]  ;;  %v858_v37 = vld [vmem:[%s1134_s5 + $0x38] sm:$0xff]   ;;  %v860_v39 = vld [vmem:[%s1136_s7 + $0x8] sm:$0xff]  }
   0xa   :  { %v859_v38 = vld [vmem:[%s1136_s7] sm:$0xff]   ;;  %v861_v40 = vld [vmem:[%s1136_s7 + $0x10] sm:$0xff]   ;;  %v862_v41 = vld [vmem:[%s1136_s7 + $0x18] sm:$0xff]  }
   0xb   :  { %737 = vmatpush3.bf16.msra.mxu0 %v836_v3  ;;  %757 = vmatpush3.bf16.msra.mxu1 %v845_v8  ;;  %v863_v42 = vld [vmem:[%s1136_s7 + $0x20] sm:$0xff]   ;;  %v864_v43 = vld [vmem:[%s1136_s7 + $0x28] sm:$0xff]   ;;  %v865_v56 = vld [vmem:[%s1136_s7 + $0x30] sm:$0xff]  }
   0xc   :  { %738 = vmatprep.subr.bf16.mxu0 %v875_v0  ;;  %758 = vmatprep.subr.bf16.mxu1 %v875_v0  ;;  %v651_v44 = vld [vmem:[%s1137_s4] ss:$0 sm:$0xff]  ;;  %v866_v57 = vld [vmem:[%s1136_s7 + $0x38] sm:$0xff]   ;;  %v868_v59 = vld [vmem:[%s1138_s9 + $0x8] sm:$0xff]  }
   0xd   :  { %v867_v58 = vld [vmem:[%s1138_s9] sm:$0xff]   ;;  %v869_v60 = vld [vmem:[%s1138_s9 + $0x10] sm:$0xff]   ;;  %v870_v61 = vld [vmem:[%s1138_s9 + $0x18] sm:$0xff]  }
   0xe   :  { %v871_v62 = vld [vmem:[%s1138_s9 + $0x20] sm:$0xff]   ;;  %v872_v63 = vld [vmem:[%s1138_s9 + $0x28] sm:$0xff]  }
   0xf   :  { %739 = vmatpush3.bf16.msra.mxu0 %v837_v5  ;;  %759 = vmatpush3.bf16.msra.mxu1 %v846_v10  ;;  %v660_v1 = vld [vmem:[%s1139_s6] ss:$0 sm:$0xff] }
  0x10   :  { %740 = vmatprep.subr.bf16.mxu0 %v875_v0  ;;  %760 = vmatprep.subr.bf16.mxu1 %v875_v0 }
  0x13   :  { %741 = vmatpush3.bf16.msra.mxu0 %v838_v7  ;;  %761 = vmatpush3.bf16.msra.mxu1 %v847_v12 }
  0x14   :  { %742 = vmatprep.subr.bf16.mxu0 %v875_v0  ;;  %762 = vmatprep.subr.bf16.mxu1 %v875_v0 }
  0x17   :  { %743 = vmatpush3.bf16.msra.mxu0 %v839_v9  ;;  %763 = vmatpush3.bf16.msra.mxu1 %v848_v14  ;;  %v874_v14 = vld [vmem:[%s1138_s9 + $0x38] sm:$0xff]  }
  0x18   :  { %744 = vmatprep.subr.bf16.mxu0 %v875_v0  ;;  %764 = vmatprep.subr.bf16.mxu1 %v875_v0 }
  0x1b   :  { %745 = vmatpush3.bf16.msra.mxu0 %v840_v11  ;;  %765 = vmatpush3.bf16.msra.mxu1 %v849_v16 }
  0x1c   :  { %746 = vmatprep.subr.bf16.mxu0 %v875_v0  ;;  %766 = vmatprep.subr.bf16.mxu1 %v875_v0 }
  0x1f   :  { %747 = vmatpush3.bf16.msra.mxu0 %v841_v13  ;;  %767 = vmatpush3.bf16.msra.mxu1 %v850_v17  ;;  %v873_v13 = vld [vmem:[%s1138_s9 + $0x30] sm:$0xff]  }
  0x20   :  { %772 = vmatprep.subr.bf16.mxu0 %v875_v0  ;;  %792 = vmatprep.subr.bf16.mxu1 %v875_v0 }
  0x22   :  { %749 = vmatmul.mubr.bf16.vlgmr.msra.gmra.mrb[0].mxu0 %v842_v15  ;;  %v669_v15 = vld [vmem:[%s1140_s8] ss:$0 sm:$0xff] }
  0x23   :  { %788 = vmatprep.mubr.msk.bf16.mxu0 %vm876_vm0, %v875_v0  ;;  %773 = vmatpush3.bf16.msra.mxu0 %v851_v18 }
  0x24   :  { %774 = vmatprep.subr.bf16.mxu0 %v875_v0 }
  0x27   :  { %775 = vmatpush3.bf16.msra.mxu0 %v852_v19 }
  0x28   :  { %776 = vmatprep.subr.bf16.mxu0 %v875_v0 }
  0x2b   :  { %777 = vmatpush3.bf16.msra.mxu0 %v853_v20 }
  0x2c   :  { %778 = vmatprep.subr.bf16.mxu0 %v875_v0 }
  0x2f   :  { %779 = vmatpush3.bf16.msra.mxu0 %v854_v21 }
  0x30   :  { %780 = vmatprep.subr.bf16.mxu0 %v875_v0 }
  0x33   :  { %781 = vmatpush3.bf16.msra.mxu0 %v855_v22 }
  0x34   :  { %782 = vmatprep.subr.bf16.mxu0 %v875_v0 }
  0x37   :  { %783 = vmatpush3.bf16.msra.mxu0 %v856_v23 }
  0x38   :  { %784 = vmatprep.subr.bf16.mxu0 %v875_v0 }
  0x3b   :  { %785 = vmatpush3.bf16.msra.mxu0 %v857_v36 }
  0x3c   :  { %786 = vmatprep.subr.bf16.mxu0 %v875_v0 }
  0x3f   :  { %787 = vmatpush3.bf16.msra.mxu0 %v858_v37 }
  0x40   :  { %812 = vmatprep.subr.bf16.mxu0 %v875_v0 }
  0xf5   :  { %v152_v25 = vpop.f32.mrb[0].mxu0 }
  0xf6   :  { %v153_v26 = vadd.f32 %v641_v24, %v152_v25  ;;  %v750_v27 = vpop.f32.mrb[1].mxu0 }
  0xf7   :  { %v155_v28 = vpop.f32.mrb[2].mxu0 }
  0xf8   :  { %v161_v29 = vmul.f32 0.01, %v153_v26  ;;  %v156_v30 = vadd.f32 %v641_v24, %v155_v28  ;;  %v751_v31 = vpop.f32.mrb[3].mxu0  ;;  %vm159_vm1 = vcmp.gt.f32.partialorder %v153_v26, 0.0 }
  0xfa   :  { %vm160_vm2 = vcmp.gt.f32.partialorder %v156_v30, 0.0  ;;  %v162_v32 = vmul.f32 0.01, %v156_v30  ;;  %v163_v33 = vsel %vm159_vm1, %v153_v26, %v161_v29  ;;  %v678_v26 = vld [vmem:[%s1141_s10] ss:$0 sm:$0xff] }
  0xfc   :  { %v164_v34 = vsel %vm160_vm2, %v156_v30, %v162_v32 }
  0xfd   :  { %v165_v35 = vpack.c.bf16 %v164_v34, %v163_v33 }
  0xff   :  { %769 = vmatmul.mubr.bf16.vlgmr.msra.gmra.mrb[0].mxu1 %v165_v35 }
 0x100   :  { %808 = vmatprep.mubr.msk.bf16.mxu1 %vm876_vm0, %v875_v0  ;;  %793 = vmatpush3.bf16.msra.mxu1 %v859_v38 }
 0x101   :  { %794 = vmatprep.subr.bf16.mxu1 %v875_v0 }
 0x104   :  { %795 = vmatpush3.bf16.msra.mxu1 %v860_v39 }
 0x105   :  { %796 = vmatprep.subr.bf16.mxu1 %v875_v0 }
 0x108   :  { %797 = vmatpush3.bf16.msra.mxu1 %v861_v40 }
 0x109   :  { %798 = vmatprep.subr.bf16.mxu1 %v875_v0 }
 0x10c   :  { %799 = vmatpush3.bf16.msra.mxu1 %v862_v41 }
 0x10d   :  { %800 = vmatprep.subr.bf16.mxu1 %v875_v0 }
 0x110   :  { %801 = vmatpush3.bf16.msra.mxu1 %v863_v42 }
 0x111   :  { %802 = vmatprep.subr.bf16.mxu1 %v875_v0 }
 0x114   :  { %803 = vmatpush3.bf16.msra.mxu1 %v864_v43 }
 0x115   :  { %804 = vmatprep.subr.bf16.mxu1 %v875_v0 }
 0x118   :  { %805 = vmatpush3.bf16.msra.mxu1 %v865_v56 }
 0x119   :  { %806 = vmatprep.subr.bf16.mxu1 %v875_v0 }
 0x11c   :  { %807 = vmatpush3.bf16.msra.mxu1 %v866_v57 }
 0x1d2   :  { %v271_v45 = vpop.f32.mrb[0].mxu1 }
 0x1d3   :  { %v272_v46 = vadd.f32 %v651_v44, %v271_v45  ;;  %v770_v47 = vpop.f32.mrb[1].mxu1 }
 0x1d4   :  { %v274_v48 = vpop.f32.mrb[2].mxu1 }
 0x1d5   :  { %v280_v49 = vmul.f32 0.01, %v272_v46  ;;  %v275_v50 = vadd.f32 %v651_v44, %v274_v48  ;;  %v771_v51 = vpop.f32.mrb[3].mxu1  ;;  %vm278_vm3 = vcmp.gt.f32.partialorder %v272_v46, 0.0 }
 0x1d7   :  { %vm279_vm4 = vcmp.gt.f32.partialorder %v275_v50, 0.0  ;;  %v281_v52 = vmul.f32 0.01, %v275_v50  ;;  %v282_v53 = vsel %vm278_vm3, %v272_v46, %v280_v49 }
 0x1d9   :  { %v283_v54 = vsel %vm279_vm4, %v275_v50, %v281_v52 }
 0x1da   :  { %v284_v55 = vpack.c.bf16 %v283_v54, %v282_v53 }
 0x1dc   :  { %789 = vmatmul.mubr.bf16.vlgmr.msra.gmra.mrb[4].mxu0 %v284_v55 }
 0x1dd   :  { %828 = vmatprep.mubr.msk.bf16.mxu0 %vm876_vm0, %v875_v0  ;;  %813 = vmatpush3.bf16.msra.mxu0 %v867_v58 }
 0x1de   :  { %814 = vmatprep.subr.bf16.mxu0 %v875_v0 }
 0x1e1   :  { %815 = vmatpush3.bf16.msra.mxu0 %v868_v59 }
 0x1e2   :  { %816 = vmatprep.subr.bf16.mxu0 %v875_v0 }
 0x1e5   :  { %817 = vmatpush3.bf16.msra.mxu0 %v869_v60 }
 0x1e6   :  { %818 = vmatprep.subr.bf16.mxu0 %v875_v0 }
 0x1e9   :  { %819 = vmatpush3.bf16.msra.mxu0 %v870_v61 }
 0x1ea   :  { %820 = vmatprep.subr.bf16.mxu0 %v875_v0 }
 0x1ed   :  { %821 = vmatpush3.bf16.msra.mxu0 %v871_v62 }
 0x1ee   :  { %822 = vmatprep.subr.bf16.mxu0 %v875_v0 }
 0x1f1   :  { %823 = vmatpush3.bf16.msra.mxu0 %v872_v63 }
 0x1f2   :  { %824 = vmatprep.subr.bf16.mxu0 %v875_v0 }
 0x1f5   :  { %825 = vmatpush3.bf16.msra.mxu0 %v873_v13 }
 0x1f6   :  { %826 = vmatprep.subr.bf16.mxu0 %v875_v0 }
 0x1f9   :  { %827 = vmatpush3.bf16.msra.mxu0 %v874_v14 }
 0x2af   :  { %v390_v2 = vpop.f32.mrb[4].mxu0 }
 0x2b0   :  { %v391_v3 = vadd.f32 %v660_v1, %v390_v2  ;;  %v790_v4 = vpop.f32.mrb[5].mxu0 }
 0x2b1   :  { %v393_v5 = vpop.f32.mrb[6].mxu0 }
 0x2b2   :  { %v399_v6 = vmul.f32 0.01, %v391_v3  ;;  %v394_v7 = vadd.f32 %v660_v1, %v393_v5  ;;  %v791_v8 = vpop.f32.mrb[7].mxu0  ;;  %vm397_vm5 = vcmp.gt.f32.partialorder %v391_v3, 0.0 }
 0x2b4   :  { %vm398_vm6 = vcmp.gt.f32.partialorder %v394_v7, 0.0  ;;  %v400_v9 = vmul.f32 0.01, %v394_v7  ;;  %v401_v10 = vsel %vm397_vm5, %v391_v3, %v399_v6 }
 0x2b6   :  { %v402_v11 = vsel %vm398_vm6, %v394_v7, %v400_v9 }
 0x2b7   :  { %v403_v12 = vpack.c.bf16 %v402_v11, %v401_v10 }
 0x2b9   :  { %809 = vmatmul.mubr.bf16.vlgmr.msra.gmra.mrb[4].mxu1 %v403_v12 }
 0x38c   :  { %v509_v16 = vpop.f32.mrb[4].mxu1 }
 0x38d   :  { %v510_v17 = vadd.f32 %v669_v15, %v509_v16  ;;  %v810_v18 = vpop.f32.mrb[5].mxu1 }
 0x38e   :  { %v512_v19 = vpop.f32.mrb[6].mxu1 }
 0x38f   :  { %v518_v20 = vmul.f32 0.01, %v510_v17  ;;  %v513_v21 = vadd.f32 %v669_v15, %v512_v19  ;;  %v811_v22 = vpop.f32.mrb[7].mxu1  ;;  %vm516_vm7 = vcmp.gt.f32.partialorder %v510_v17, 0.0 }
 0x391   :  { %vm517_vm8 = vcmp.gt.f32.partialorder %v513_v21, 0.0  ;;  %v519_v23 = vmul.f32 0.01, %v513_v21  ;;  %v520_v0 = vsel %vm516_vm7, %v510_v17, %v518_v20 }
 0x393   :  { %v521_v24 = vsel %vm517_vm8, %v513_v21, %v519_v23 }
 0x394   :  { %v522_v25 = vpack.c.bf16 %v521_v24, %v520_v0 }
 0x396   :  { %829 = vmatmul.mubr.bf16.vlgmr.msra.gmra.mrb[8].mxu0 %v522_v25 }
 0x469   :  { %v628_v27 = vpop.f32.mrb[8].mxu0 }
 0x46a   :  { %v629_v28 = vadd.f32 %v678_v26, %v628_v27  ;;  %v830_v29 = vpop.f32.mrb[9].mxu0 }
 0x46b   :  { %v631_v30 = vpop.f32.mrb[10].mxu0 }
 0x46c   :  { %635 = vst [vmem:[%s1142_s11] sm:$0xff] %v629_v28  ;;  %v632_v31 = vadd.f32 %v678_v26, %v631_v30  ;;  %v831_v32 = vpop.f32.mrb[11].mxu0 }
 0x46e   :  { %636 = vst [vmem:[%s1142_s11 + $0x8] sm:$0xff] %v632_v31 }

</bundles_post_ra>
